<compile_context>
chip_gen: v6e
topology: v6e:2x2x1
jax: 0.10.0
libtpu: 0.0.40
codegen_flags: <defaults>
</compile_context>

<pallas_src>
import functools

import jax
import jax.numpy as jnp
from jax.experimental import pallas as pl
from jax.experimental.pallas import tpu as pltpu


def _round_up(n, m):
    return ((n + m - 1) // m) * m


def _mlp_kernel(x_ref, w1_ref, b1_ref, w2_ref, b2_ref, w3_ref, b3_ref, o_ref,
                *, compute_dtype):
    cd = compute_dtype

    # Put batch in the lane dim for the whole kernel: one small XLU transpose of the
    # input tile (tile_b, sa_dim) -> (sa_dim, tile_b).  Everything downstream is then
    # standard (K-contracting) MXU matmuls and the output is produced lane-dense.
    x_t = x_ref[...].T.astype(cd)                                    # (sa_dim, tile_b)

    # Layer 1: W1 (256, sa_dim) @ x_t -> (256, tile_b); f32 accumulate, column bias.
    h1 = jnp.dot(w1_ref[...].astype(cd), x_t,
                 preferred_element_type=jnp.float32) + b1_ref[...]   # (256, tile_b)
    h1 = jnp.tanh(h1.astype(cd))                                     # EUP

    # Layer 2: W2 (128, 256) @ h1 -> (128, tile_b)
    h2 = jnp.dot(w2_ref[...].astype(cd), h1,
                 preferred_element_type=jnp.float32) + b2_ref[...]   # (128, tile_b)
    h2 = jnp.tanh(h2.astype(cd)).astype(jnp.float32)

    # Output layer (128 -> 1): VPU multiply by the weight column + sublane (XLU)
    # reduction -> lane-dense (1, tile_b) row.  Keeps the MXU free of an M=1 matmul
    # and the store path unmasked / lane-dense.
    y_row = jnp.sum(h2 * w3_ref[...], axis=0, keepdims=True) + b3_ref[0]  # (1, tile_b)
    o_ref[...] = y_row.astype(o_ref.dtype)


def discriminator_forward(x, params, *, tile_b=512, compute_dtype=jnp.float32):
    """x: (B, sa_dim) float32.

    params (PyTorch-native layouts):
      w1: (256, sa_dim)  == hidden1.weight      b1: (256, 1) == hidden1.bias[:, None]
      w2: (128, 256)     == hidden2.weight      b2: (128, 1) == hidden2.bias[:, None]
      w3: (128, 1)       == output.weight.T     b3: (1,)     == output.bias
    Returns (B, 1) float32.
    """
    w1, b1 = params["w1"], params["b1"]
    w2, b2 = params["w2"], params["b2"]
    w3, b3 = params["w3"], params["b3"]

    B, sa_dim = x.shape

    # tile_b must be a multiple of 128 so the (1, tile_b) output block is lane-dense.
    tile_b = max(128, min(tile_b, _round_up(B, 128)))
    tile_b = _round_up(tile_b, 128)
    b_pad = _round_up(B, tile_b)
    if b_pad != B:
        x = jnp.pad(x, ((0, b_pad - B), (0, 0)))
    num_tiles = b_pad // tile_b

    flops = 2 * b_pad * (sa_dim * 256 + 256 * 128 + 128)
    transcendentals = b_pad * (256 + 128)
    bytes_accessed = int(
        b_pad * sa_dim * 4                                        # x
        + (256 * sa_dim + 256 + 128 * 256 + 128 + 128 + 1) * 4    # weights / biases
        + b_pad * 4                                               # compact output row
    )

    out_row = pl.pallas_call(
        functools.partial(_mlp_kernel, compute_dtype=compute_dtype),
        out_shape=jax.ShapeDtypeStruct((1, b_pad), jnp.float32),
        grid=(num_tiles,),
        in_specs=[
            pl.BlockSpec((tile_b, sa_dim), lambda i: (i, 0)),   # x: tiled over batch
            pl.BlockSpec((256, sa_dim), lambda i: (0, 0)),      # w1: VMEM-resident
            pl.BlockSpec((256, 1), lambda i: (0, 0)),           # b1 (column)
            pl.BlockSpec((128, 256), lambda i: (0, 0)),         # w2
            pl.BlockSpec((128, 1), lambda i: (0, 0)),           # b2 (column)
            pl.BlockSpec((128, 1), lambda i: (0, 0)),           # w3 (column)
            pl.BlockSpec(memory_space=pltpu.SMEM),              # b3 scalar
        ],
        out_specs=pl.BlockSpec((1, tile_b), lambda i: (0, i)),  # lane-dense row
        compiler_params=pltpu.CompilerParams(
            dimension_semantics=("parallel",),    # batch tiles -> both TCs on v7x
        ),
        cost_estimate=pl.CostEstimate(
            flops=flops,
            transcendentals=transcendentals,
            bytes_accessed=bytes_accessed,
        ),
    )(x, w1, b1, w2, b2, w3, b3)

    # Drop batch padding; return as (B, 1) like the PyTorch module.
    return out_row[0, :B][:, None]


def init_params(key, sa_dim):
    """Deterministic synthetic init; shapes match nn.Linear(sa_dim,256)->(256,128)->(128,1)
    in native PyTorch (out, in) layout."""
    k1, k2, k3, k4, k5, k6 = jax.random.split(key, 6)

    def uniform(k, shape, fan_in):
        bound = 1.0 / jnp.sqrt(fan_in)
        return jax.random.uniform(k, shape, jnp.float32, -bound, bound)

    return {
        "w1": uniform(k1, (256, sa_dim), sa_dim),   # hidden1.weight
        "b1": uniform(k2, (256, 1), sa_dim),        # hidden1.bias as a column
        "w2": uniform(k3, (128, 256), 256),         # hidden2.weight
        "b2": uniform(k4, (128, 1), 256),           # hidden2.bias as a column
        "w3": uniform(k5, (128, 1), 128),           # output.weight.T
        "b3": uniform(k6, (1,), 128),               # output.bias
    }


def _reference(x, p):
    h1 = jnp.tanh(x @ p["w1"].T + p["b1"][:, 0])
    h2 = jnp.tanh(h1 @ p["w2"].T + p["b2"][:, 0])
    return h2 @ p["w3"] + p["b3"]


if __name__ == "__main__":
    key = jax.random.PRNGKey(0)
    kx, kp = jax.random.split(key)

    # Small but non-trivial batch so the grid (2 tiles of 128) + remainder padding is exercised.
    B, sa_dim = 200, 32
    x = jax.random.normal(kx, (B, sa_dim), dtype=jnp.float32)
    params = init_params(kp, sa_dim)

    out = discriminator_forward(x, params, tile_b=128)
    out = jax.block_until_ready(out)

    ref = _reference(x, params)
    assert out.shape == (B, 1), out.shape
    # Tolerance leaves headroom for TPU default matmul-precision / summation-order
    # differences between the transposed in-kernel matmuls and the XLA reference.
    assert jnp.allclose(out, ref, atol=1e-3, rtol=1e-3), "mismatch vs reference"

    # TODO(synk): for production on v6e/v7x, call with compute_dtype=jnp.bfloat16 (bf16 MXU
    # inputs + bf16 EUP tanh) and validate against the f32 reference with ~1e-2 tolerance;
    # keep the f32 default on v5e.
    print("KERNEL_OK")
</pallas_src>

<mosaic_0001>
module attributes {stable_mosaic.version = 11 : i64} {
  func.func @_mlp_kernel(%arg0: i32, %arg1: memref<128x32xf32, #tpu.memory_space<vmem>>, %arg2: memref<256x32xf32, #tpu.memory_space<vmem>>, %arg3: memref<256x1xf32, #tpu.memory_space<vmem>>, %arg4: memref<128x256xf32, #tpu.memory_space<vmem>>, %arg5: memref<128x1xf32, #tpu.memory_space<vmem>>, %arg6: memref<128x1xf32, #tpu.memory_space<vmem>>, %arg7: memref<1xf32, #tpu.memory_space<smem>>, %arg8: memref<1x128xf32, #tpu.memory_space<vmem>>) attributes {dimension_semantics = [#tpu.dimension_semantics<parallel>], iteration_bounds = array<i64: 2>, scalar_prefetch = 0 : i64, scratch_operands = 0 : i64, tpu.core_type = #tpu.core_type<tc>, window_params = [{transform_indices = @transform_0, window_bounds = array<i64: 128, 32>}, {pipeline_mode = #tpu.pipeline_mode<synchronous>, transform_indices = @transform_1, window_bounds = array<i64: 256, 32>}, {pipeline_mode = #tpu.pipeline_mode<synchronous>, transform_indices = @transform_2, window_bounds = array<i64: 256, 1>}, {pipeline_mode = #tpu.pipeline_mode<synchronous>, transform_indices = @transform_3, window_bounds = array<i64: 128, 256>}, {pipeline_mode = #tpu.pipeline_mode<synchronous>, transform_indices = @transform_4, window_bounds = array<i64: 128, 1>}, {pipeline_mode = #tpu.pipeline_mode<synchronous>, transform_indices = @transform_5, window_bounds = array<i64: 128, 1>}, {transform_indices = @transform_6, window_bounds = array<i64: 1>}, {transform_indices = @transform_7, window_bounds = array<i64: 1, 128>}]} {
    %c0 = arith.constant 0 : index
    %c0_0 = arith.constant 0 : index
    %0 = vector.load %arg1[%c0, %c0_0] : memref<128x32xf32, #tpu.memory_space<vmem>>, vector<128x32xf32>
    %1 = tpu.transpose %0, [1, 0] : vector<128x32xf32> -> vector<32x128xf32>
    %c0_1 = arith.constant 0 : index
    %c0_2 = arith.constant 0 : index
    %2 = vector.load %arg2[%c0_1, %c0_2] : memref<256x32xf32, #tpu.memory_space<vmem>>, vector<256x32xf32>
    %cst = arith.constant dense<0.000000e+00> : vector<256x128xf32>
    %3 = tpu.matmul %2, %1, %cst {dimension_numbers = #tpu.dot_dimension_numbers<[1], [0], [0], [1], [0, 0, 1, 1], [], []>} : vector<256x32xf32>, vector<32x128xf32>, vector<256x128xf32> -> vector<256x128xf32>
    %c0_3 = arith.constant 0 : index
    %c0_4 = arith.constant 0 : index
    %4 = vector.load %arg3[%c0_3, %c0_4] : memref<256x1xf32, #tpu.memory_space<vmem>>, vector<256x1xf32>
    %5 = vector.broadcast %4 : vector<256x1xf32> to vector<256x128xf32>
    %6 = arith.addf %3, %5 : vector<256x128xf32>
    %7 = math.tanh %6 : vector<256x128xf32>
    %c0_5 = arith.constant 0 : index
    %c0_6 = arith.constant 0 : index
    %8 = vector.load %arg4[%c0_5, %c0_6] : memref<128x256xf32, #tpu.memory_space<vmem>>, vector<128x256xf32>
    %cst_7 = arith.constant dense<0.000000e+00> : vector<128x128xf32>
    %9 = tpu.matmul %8, %7, %cst_7 {dimension_numbers = #tpu.dot_dimension_numbers<[1], [0], [0], [1], [0, 0, 1, 1], [], []>} : vector<128x256xf32>, vector<256x128xf32>, vector<128x128xf32> -> vector<128x128xf32>
    %c0_8 = arith.constant 0 : index
    %c0_9 = arith.constant 0 : index
    %10 = vector.load %arg5[%c0_8, %c0_9] : memref<128x1xf32, #tpu.memory_space<vmem>>, vector<128x1xf32>
    %11 = vector.broadcast %10 : vector<128x1xf32> to vector<128x128xf32>
    %12 = arith.addf %9, %11 : vector<128x128xf32>
    %13 = math.tanh %12 : vector<128x128xf32>
    %c0_10 = arith.constant 0 : index
    %c0_11 = arith.constant 0 : index
    %14 = vector.load %arg6[%c0_10, %c0_11] : memref<128x1xf32, #tpu.memory_space<vmem>>, vector<128x1xf32>
    %15 = vector.broadcast %14 : vector<128x1xf32> to vector<128x128xf32>
    %16 = arith.mulf %13, %15 : vector<128x128xf32>
    %cst_12 = arith.constant dense<0.000000e+00> : vector<128xf32>
    %17 = vector.multi_reduction <add>, %16, %cst_12 [0] : vector<128x128xf32> to vector<128xf32>
    %18 = vector.shape_cast %17 : vector<128xf32> to vector<1x128xf32>
    %c0_13 = arith.constant 0 : index
    %19 = memref.load %arg7[%c0_13] : memref<1xf32, #tpu.memory_space<smem>>
    %20 = vector.broadcast %19 : f32 to vector<1x128xf32>
    %21 = arith.addf %18, %20 : vector<1x128xf32>
    %c0_14 = arith.constant 0 : index
    %c0_15 = arith.constant 0 : index
    %22 = vector.load %arg8[%c0_14, %c0_15] : memref<1x128xf32, #tpu.memory_space<vmem>>, vector<1x128xf32>
    tpu.vector_store %arg8[%c0_14, %c0_15], %21 {strides = array<i32>} : memref<1x128xf32, #tpu.memory_space<vmem>>, vector<1x128xf32>,
    return
  }
  func.func @transform_0(%arg0: i32) -> (i32, i32) {
    %c0_i32 = arith.constant 0 : i32
    %c0_i32_0 = arith.constant 0 : i32
    return %arg0, %c0_i32 : i32, i32
  }
  func.func @transform_1(%arg0: i32) -> (i32, i32) {
    %c0_i32 = arith.constant 0 : i32
    %c0_i32_0 = arith.constant 0 : i32
    %c0_i32_1 = arith.constant 0 : i32
    return %c0_i32, %c0_i32_0 : i32, i32
  }
  func.func @transform_2(%arg0: i32) -> (i32, i32) {
    %c0_i32 = arith.constant 0 : i32
    %c0_i32_0 = arith.constant 0 : i32
    %c0_i32_1 = arith.constant 0 : i32
    return %c0_i32, %c0_i32_0 : i32, i32
  }
  func.func @transform_3(%arg0: i32) -> (i32, i32) {
    %c0_i32 = arith.constant 0 : i32
    %c0_i32_0 = arith.constant 0 : i32
    %c0_i32_1 = arith.constant 0 : i32
    return %c0_i32, %c0_i32_0 : i32, i32
  }
  func.func @transform_4(%arg0: i32) -> (i32, i32) {
    %c0_i32 = arith.constant 0 : i32
    %c0_i32_0 = arith.constant 0 : i32
    %c0_i32_1 = arith.constant 0 : i32
    return %c0_i32, %c0_i32_0 : i32, i32
  }
  func.func @transform_5(%arg0: i32) -> (i32, i32) {
    %c0_i32 = arith.constant 0 : i32
    %c0_i32_0 = arith.constant 0 : i32
    %c0_i32_1 = arith.constant 0 : i32
    return %c0_i32, %c0_i32_0 : i32, i32
  }
  func.func @transform_6(%arg0: i32) -> i32 {
    %c0_i32 = arith.constant 0 : i32
    %c0_i32_0 = arith.constant 0 : i32
    return %c0_i32 : i32
  }
  func.func @transform_7(%arg0: i32) -> (i32, i32) {
    %c0_i32 = arith.constant 0 : i32
    %c0_i32_0 = arith.constant 0 : i32
    return %c0_i32, %arg0 : i32, i32
  }
}

</mosaic_0001>

<bundles_post_ra>
// kernel: tpu_custom_call.1
= control target key start
LH: loop header
LB: loop body
LE: loop exit
PB: predicated region body
PF: predicated region fallthrough
CT: control target
= control target key end

     0   :  { %s2531_s0 = inlined_call_operand.vmem [shape: f32[256,32], index: 0, kind: input, shape index: {}]   ;;  %s2532_s1 = inlined_call_operand.vmem [shape: f32[256,32], index: 1, kind: input, shape index: {}]   ;;  %s2533_s2 = inlined_call_operand.vmem [shape: f32[256,1], index: 2, kind: input, shape index: {}]   ;;  %s2534_s3 = inlined_call_operand.vmem [shape: f32[128,256], index: 3, kind: input, shape index: {}]   ;;  %s2535_s4 = inlined_call_operand.vmem [shape: f32[128,1], index: 4, kind: input, shape index: {}]   ;;  %s2536_s5 = inlined_call_operand.vmem [shape: f32[128,1], index: 5, kind: input, shape index: {}]   ;;  %s2537_s6 = inlined_call_operand.<no memory space> [shape: f32[1], index: 6, kind: input, shape index: {}]   ;;  %s2538_s7 = inlined_call_operand.hbm [shape: f32[1,256], index: 7, kind: output, shape index: {}]  }
   0x1   :  { %12 = sst [smem:[#allocation2]] %s2537_s6 }
   0x2   :  { %13 = vsyncpa [#allocation4], 0 }
   0x3   :  { %15 = vsyncpa [#allocation4 + $0x1], 0  ;;  %s1925_s26 = smov 0   ;;  %s1927_s27 = smov 0  }
   0x4   :  { %s1929_s28 = smov 0   ;;  %s1931_s29 = smov 0  }
   0x5 LB: > { %s1414_s6 = sadd.s32 4294967295, %s1878_s29   ;;  %s1415_s30 = sadd.s32 4294967294, %s1878_s29   ;;  %s1878_s29 = sphi %s1931_s29, %s2548_s29   ;;  %s1874_s28 = sphi %s1929_s28, %s2547_s28   ;;  %s1870_s27 = sphi %s1927_s27, %s2546_s27   ;;  %s1866_s26 = sphi %s1925_s26, %s2545_s26  }
   0x6   : > { %s1948_s8 = sadd.s32 1, %s1878_s29   ;;  %s180_s9 = sadd.s32 1, %s1874_s28 }
   0x7   : > { %s177_s10 = ssub.s32 %s1878_s29, %s1948_s8  ;;  %p190_p0 = scmp.ne.s32.totalorder %s1874_s28, %s1870_s27 }
   0x8   : > { %p178_p1 = scmp.eq.s32.totalorder %s177_s10, 0  ;;  %p191_p2 = scmp.eq.s32.totalorder %s1414_s6, 1 }
   0x9   : > { %p196_p3 = scmp.ne.s32.totalorder %s1870_s27, %s1866_s26  ;;  %p197_p4 = scmp.eq.s32.totalorder %s1415_s30, 1 }
   0xa   : > { %s1958_s11 = scalar_select %p178_p1, %s1874_s28, %s180_s9  }
   0xb   : > { %p1960_p5 = por %p191_p2, %p190_p0  ;;  %p1964_p6 = por %p197_p4, %p196_p3 }
   0xc   : > { %p1418_p7 = scmp.ge.s32.totalorder %s1878_s29, 1  ;;  %p242_p8 = scmp.lt.s32.totalorder %s1878_s29, 3 }
   0xe   : > { %p243_p9 = pnand %p1418_p7, %p242_p8 }
  0x10   : > { %246 = sbr.rel (%p243_p9) target bundleno = 698 (0x2ba), region = 48 }
  0x15   : > { %s1970_s14 = sshll.u32 %s1414_s6, 4  ;;  %v358_v0 = vld [vmem:[%s2533_s2 + $0xf8] sm:$0xff]  ;;  %v357_v1 = vld [vmem:[%s2533_s2 + $0xf0] sm:$0xff]  ;;  %v1880_v2 = vmov 0   ;;  %vm519_vm0 = vcmask 261120   ;;  %v295_v5 = vld [vmem:[%s2532_s1] sm:$0xff] }
  0x16   : > { %p274_p10 = scmp.lt.s32.totalorder %s1970_s14, 31  ;;  %1720 = vset.pattern.permute.xlu0 %v1880_v2  ;;  %1721 = vset.pattern.permute.xlu1 %v1880_v2  ;;  %v342_v3 = vld [vmem:[%s2533_s2 + $0x78] sm:$0xff]  ;;  %v341_v4 = vld [vmem:[%s2533_s2 + $0x70] sm:$0xff]  ;;  %v356_v8 = vld [vmem:[%s2533_s2 + $0xe8] sm:$0xff]  ;;  %s1343_s24 = sld [smem:[#allocation2]] }
  0x17   : > { %516 = vperm.xlu0 %1720, %v358_v0   ;;  %511 = vperm.xlu1 %1721, %v357_v1   ;;  %v340_v9 = vld [vmem:[%s2533_s2 + $0x68] sm:$0xff]  ;;  %v355_v11 = vld [vmem:[%s2533_s2 + $0xe0] sm:$0xff]  ;;  %v354_v14 = vld [vmem:[%s2533_s2 + $0xd8] sm:$0xff]  ;;  %s271_s25 = sand.u32 1, %s1870_s27   ;;  %s1358_s16 = scalar_lea.hbm %s2538_s7, %s1970_s14 }
  0x18   : > { %s275_s19 = scalar_select %p274_p10, %s1970_s14, 31  ;;  %1632 = vmatprep.mubr.msk.f32.mxu0 %vm519_vm0, %v295_v5  ;;  %v339_v12 = vld [vmem:[%s2533_s2 + $0x60] sm:$0xff]  ;;  %v338_v15 = vld [vmem:[%s2533_s2 + $0x58] sm:$0xff]  ;;  %v353_v17 = vld [vmem:[%s2533_s2 + $0xd0] sm:$0xff] }
  0x19   : > { %v337_v18 = vld [vmem:[%s2533_s2 + $0x50] sm:$0xff]  ;;  %v352_v20 = vld [vmem:[%s2533_s2 + $0xc8] sm:$0xff]  ;;  %v351_v23 = vld [vmem:[%s2533_s2 + $0xc0] sm:$0xff]  ;;  %s1348_s17 = scalar_lea.sflag [#allocation4], %s271_s25 }
  0x1a   : > { %s1420_s6 = sshll.u32 %s275_s19, 3  ;;  %v336_v21 = vld [vmem:[%s2533_s2 + $0x48] sm:$0xff]  ;;  %v335_v24 = vld [vmem:[%s2533_s2 + $0x40] sm:$0xff]  ;;  %v350_v26 = vld [vmem:[%s2533_s2 + $0xb8] sm:$0xff]  ;;  %s1881_s19 = smov [#allocation3]  }
  0x1b   : > { %s1993_s10 = scalar_lea.vmem %s2531_s0, %s1420_s6  ;;  %436 = vperm.xlu0 %1720, %v342_v3   ;;  %431 = vperm.xlu1 %1721, %v341_v4   ;;  %v334_v27 = vld [vmem:[%s2533_s2 + $0x38] sm:$0xff]  ;;  %v349_v29 = vld [vmem:[%s2533_s2 + $0xb0] sm:$0xff]  ;;  %v348_v32 = vld [vmem:[%s2533_s2 + $0xa8] sm:$0xff]  ;;  %s272_s6 = scalar_lea.vmem [#allocation3], %s271_s25 }
  0x1c   : > { %v294_v6 = vld [vmem:[%s1993_s10 + $0x78] sm:$0xff]  ;;  %v293_v7 = vld [vmem:[%s1993_s10 + $0x70] sm:$0xff]  ;;  %v292_v10 = vld [vmem:[%s1993_s10 + $0x68] sm:$0xff]  ;;  %s1360_s30 = sshll.u32 %s272_s6, 4  ;;  %s1822_s20 = sshll.u32 %s1881_s19, 4  ;;  %s1361_s30 = int_to_ptr.vmem [resolvable:$true] %s1360_s30  ;;  %s1823_s20 = int_to_ptr.vmem [resolvable:$false] %s1822_s20 }
  0x1d   : > { %1600 = vmatprep.subr.msk.mxu0 %vm519_vm0, %v294_v6  ;;  %v291_v13 = vld [vmem:[%s1993_s10 + $0x60] sm:$0xff]  ;;  %v290_v16 = vld [vmem:[%s1993_s10 + $0x58] sm:$0xff]  ;;  %v289_v19 = vld [vmem:[%s1993_s10 + $0x50] sm:$0xff]  ;;  %s1818_s18 = scalar_lea.vmem %s1361_s30, 16  ;;  %p1825_p0 = scmp.lt.s32.totalorder %s1361_s30, %s1823_s20 }
  0x1e   : > { %1601 = vmatpush3.xpose.msk.msra.mxu0 %vm519_vm0, %v294_v6  ;;  %v288_v22 = vld [vmem:[%s1993_s10 + $0x48] sm:$0xff]  ;;  %v287_v25 = vld [vmem:[%s1993_s10 + $0x40] sm:$0xff]  ;;  %v286_v28 = vld [vmem:[%s1993_s10 + $0x38] sm:$0xff]  ;;  %p1819_p11 = scmp.ne.s32.totalorder %s1361_s30, %s1818_s18 }
  0x1f   : > { %1602 = vmatprep.subr.msk.mxu0 %vm519_vm0, %v293_v7  ;;  %506 = vperm.xlu0 %1720, %v356_v8   ;;  %v333_v30 = vld [vmem:[%s2533_s2 + $0x30] sm:$0xff]  ;;  %v332_v33 = vld [vmem:[%s2533_s2 + $0x28] sm:$0xff]  ;;  %v347_v35 = vld [vmem:[%s2533_s2 + $0xa0] sm:$0xff] }
  0x20   : > { %426 = vperm.xlu1 %1721, %v340_v9   ;;  %v285_v31 = vld [vmem:[%s1993_s10 + $0x30] sm:$0xff]  ;;  %v284_v34 = vld [vmem:[%s1993_s10 + $0x28] sm:$0xff]  ;;  %v331_v36 = vld [vmem:[%s2533_s2 + $0x20] sm:$0xff]  ;;  %p1820_p12 = pnand %p1819_p11, %p1960_p5 }
  0x21   : > { %v283_v37 = vld [vmem:[%s1993_s10 + $0x20] sm:$0xff]  ;;  %v346_v38 = vld [vmem:[%s2533_s2 + $0x98] sm:$0xff]  ;;  %v345_v41 = vld [vmem:[%s2533_s2 + $0x90] sm:$0xff] }
  0x22   : > { %1603 = vmatpush3.xpose.msk.msra.mxu0 %vm519_vm0, %v293_v7  ;;  %v330_v39 = vld [vmem:[%s2533_s2 + $0x18] sm:$0xff]  ;;  %v329_v42 = vld [vmem:[%s2533_s2 + $0x10] sm:$0xff]  ;;  %v344_v44 = vld [vmem:[%s2533_s2 + $0x88] sm:$0xff]  ;;  %p1821_p13 = pneg %p1820_p12 }
  0x23   : > { %1604 = vmatprep.subr.msk.mxu0 %vm519_vm0, %v292_v10  ;;  %501 = vperm.xlu0 %1720, %v355_v11   ;;  %v282_v40 = vld [vmem:[%s1993_s10 + $0x18] sm:$0xff]  ;;  %v281_v43 = vld [vmem:[%s1993_s10 + $0x10] sm:$0xff]  ;;  %v328_v45 = vld [vmem:[%s2533_s2 + $0x8] sm:$0xff] }
  0x24   : > { %421 = vperm.xlu1 %1721, %v339_v12   ;;  %v280_v46 = vld [vmem:[%s1993_s10 + $0x8] sm:$0xff]  ;;  %v343_v47 = vld [vmem:[%s2533_s2 + $0x80] sm:$0xff]  ;;  %v955_v52 = vld [vmem:[%s2535_s4 + $0x10] sm:$0xff] }
  0x25   : > { %v327_v48 = vld [vmem:[%s2533_s2] sm:$0xff]  ;;  %v954_v51 = vld [vmem:[%s2535_s4 + $0x8] sm:$0xff]  ;;  %v956_v53 = vld [vmem:[%s2535_s4 + $0x18] sm:$0xff] }
  0x26   : > { %1605 = vmatpush3.xpose.msk.msra.mxu0 %vm519_vm0, %v292_v10  ;;  %v279_v49 = vld [vmem:[%s1993_s10] sm:$0xff]  ;;  %v296_v54 = vld [vmem:[%s2532_s1 + $0x8] sm:$0xff]  ;;  %v297_v55 = vld [vmem:[%s2532_s1 + $0x10] sm:$0xff]  ;;  %s1824_s10 = scalar_lea.vmem %s1823_s20, 32 }
  0x27   : > { %1606 = vmatprep.subr.msk.mxu0 %vm519_vm0, %v291_v13  ;;  %496 = vperm.xlu0 %1720, %v354_v14   ;;  %v953_v50 = vld [vmem:[%s2535_s4] sm:$0xff]  ;;  %v958_v57 = vld [vmem:[%s2535_s4 + $0x28] sm:$0xff]  ;;  %v298_v58 = vld [vmem:[%s2532_s1 + $0x18] sm:$0xff]  ;;  %p1826_p1 = scmp.lt.s32.totalorder %s1824_s10, %s1818_s18 }
  0x28   : > { %416 = vperm.xlu1 %1721, %v338_v15   ;;  %v957_v56 = vld [vmem:[%s2535_s4 + $0x20] sm:$0xff]  ;;  %v959_v60 = vld [vmem:[%s2535_s4 + $0x30] sm:$0xff]  ;;  %v960_v61 = vld [vmem:[%s2535_s4 + $0x38] sm:$0xff] }
  0x29   : > { %v299_v59 = vld [vmem:[%s2532_s1 + $0x20] sm:$0xff]  ;;  %v300_v62 = vld [vmem:[%s2532_s1 + $0x28] sm:$0xff]  ;;  %v301_v63 = vld [vmem:[%s2532_s1 + $0x30] sm:$0xff]  ;;  %p1827_p2 = por %p1826_p1, %p1825_p0 }
  0x2a   : > { %1607 = vmatpush3.xpose.msk.msra.mxu0 %vm519_vm0, %v291_v13  ;;  %v961_v0 = vld [vmem:[%s2535_s4 + $0x40] sm:$0xff]  ;;  %v962_v1 = vld [vmem:[%s2535_s4 + $0x48] sm:$0xff]  ;;  %v302_v2 = vld [vmem:[%s2532_s1 + $0x38] sm:$0xff] }
  0x2b   : > { %1608 = vmatprep.subr.msk.mxu0 %vm519_vm0, %v290_v16  ;;  %491 = vperm.xlu0 %1720, %v353_v17   ;;  %v303_v3 = vld [vmem:[%s2532_s1 + $0x40] sm:$0xff]  ;;  %v1211_v5 = vld [vmem:[%s2536_s5 + $0x8] sm:$0xff]  ;;  %v305_v7 = vld [vmem:[%s2532_s1 + $0x50] sm:$0xff]  ;;  %p1828_p3 = pnand %p1827_p2, %p1821_p13 }
  0x2c   : > { %411 = vperm.xlu1 %1721, %v337_v18   ;;  %v1210_v4 = vld [vmem:[%s2536_s5] sm:$0xff]  ;;  %v304_v6 = vld [vmem:[%s2532_s1 + $0x48] sm:$0xff]  ;;  %v963_v8 = vld [vmem:[%s2535_s4 + $0x50] sm:$0xff] }
  0x2d   : > { %v1212_v9 = vld [vmem:[%s2536_s5 + $0x10] sm:$0xff]  ;;  %v306_v10 = vld [vmem:[%s2532_s1 + $0x58] sm:$0xff]  ;;  %v307_v11 = vld [vmem:[%s2532_s1 + $0x60] sm:$0xff] }
  0x2e   : > { %1609 = vmatpush3.xpose.msk.msra.mxu0 %vm519_vm0, %v290_v16  ;;  %v964_v12 = vld [vmem:[%s2535_s4 + $0x58] sm:$0xff]  ;;  %v308_v14 = vld [vmem:[%s2532_s1 + $0x68] sm:$0xff]  ;;  %v309_v15 = vld [vmem:[%s2532_s1 + $0x70] sm:$0xff] }
  0x2f   : > { %1610 = vmatprep.subr.msk.mxu0 %vm519_vm0, %v289_v19  ;;  %486 = vperm.xlu0 %1720, %v352_v20   ;;  %v1213_v13 = vld [vmem:[%s2536_s5 + $0x18] sm:$0xff]  ;;  %v965_v16 = vld [vmem:[%s2535_s4 + $0x60] sm:$0xff]  ;;  %v966_v20 = vld [vmem:[%s2535_s4 + $0x68] sm:$0xff] }
  0x30   : > { %406 = vperm.xlu1 %1721, %v336_v21   ;;  %v1214_v17 = vld [vmem:[%s2536_s5 + $0x20] sm:$0xff]  ;;  %v310_v18 = vld [vmem:[%s2532_s1 + $0x78] sm:$0xff]  ;;  %v1215_v21 = vld [vmem:[%s2536_s5 + $0x28] sm:$0xff] }
  0x32   : > { %1611 = vmatpush3.xpose.msk.msra.mxu0 %vm519_vm0, %v289_v19  ;;  %v311_v19 = vld [vmem:[%s2532_s1 + $0x80] sm:$0xff] }
  0x33   : > { %1612 = vmatprep.subr.msk.mxu0 %vm519_vm0, %v288_v22  ;;  %481 = vperm.xlu0 %1720, %v351_v23   ;;  %v313_v23 = vld [vmem:[%s2532_s1 + $0x90] sm:$0xff] }
  0x34   : > { %401 = vperm.xlu1 %1721, %v335_v24   ;;  %v967_v24 = vld [vmem:[%s2535_s4 + $0x70] sm:$0xff] }
  0x36   : > { %1613 = vmatpush3.xpose.msk.msra.mxu0 %vm519_vm0, %v288_v22  ;;  %v312_v22 = vld [vmem:[%s2532_s1 + $0x88] sm:$0xff] }
  0x37   : > { %1614 = vmatprep.subr.msk.mxu0 %vm519_vm0, %v287_v25  ;;  %476 = vperm.xlu0 %1720, %v350_v26   ;;  %v314_v26 = vld [vmem:[%s2532_s1 + $0x98] sm:$0xff] }
  0x38   : > { %396 = vperm.xlu1 %1721, %v334_v27   ;;  %v315_v27 = vld [vmem:[%s2532_s1 + $0xa0] sm:$0xff] }
  0x3a   : > { %1615 = vmatpush3.xpose.msk.msra.mxu0 %vm519_vm0, %v287_v25  ;;  %v1216_v25 = vld [vmem:[%s2536_s5 + $0x30] sm:$0xff] }
  0x3b   : > { %1616 = vmatprep.subr.msk.mxu0 %vm519_vm0, %v286_v28  ;;  %471 = vperm.xlu0 %1720, %v349_v29   ;;  %v1217_v29 = vld [vmem:[%s2536_s5 + $0x38] sm:$0xff] }
  0x3c   : > { %391 = vperm.xlu1 %1721, %v333_v30   ;;  %v316_v30 = vld [vmem:[%s2532_s1 + $0xa8] sm:$0xff] }
  0x3e   : > { %1617 = vmatpush3.xpose.msk.msra.mxu0 %vm519_vm0, %v286_v28  ;;  %v968_v28 = vld [vmem:[%s2535_s4 + $0x78] sm:$0xff] }
  0x3f   : > { %1618 = vmatprep.subr.msk.mxu0 %vm519_vm0, %v285_v31  ;;  %466 = vperm.xlu0 %1720, %v348_v32   ;;  %v1218_v32 = vld [vmem:[%s2536_s5 + $0x40] sm:$0xff] }
  0x40   : > { %386 = vperm.xlu1 %1721, %v332_v33   ;;  %v1219_v33 = vld [vmem:[%s2536_s5 + $0x48] sm:$0xff] }
  0x42   : > { %1619 = vmatpush3.xpose.msk.msra.mxu0 %vm519_vm0, %v285_v31  ;;  %v317_v31 = vld [vmem:[%s2532_s1 + $0xb0] sm:$0xff] }
  0x43   : > { %1620 = vmatprep.subr.msk.mxu0 %vm519_vm0, %v284_v34  ;;  %461 = vperm.xlu0 %1720, %v347_v35   ;;  %v319_v35 = vld [vmem:[%s2532_s1 + $0xc0] sm:$0xff] }
  0x44   : > { %381 = vperm.xlu1 %1721, %v331_v36   ;;  %v1220_v36 = vld [vmem:[%s2536_s5 + $0x50] sm:$0xff] }
  0x46   : > { %1621 = vmatpush3.xpose.msk.msra.mxu0 %vm519_vm0, %v284_v34  ;;  %v318_v34 = vld [vmem:[%s2532_s1 + $0xb8] sm:$0xff] }
  0x47   : > { %1622 = vmatprep.subr.msk.mxu0 %vm519_vm0, %v283_v37  ;;  %456 = vperm.xlu0 %1720, %v346_v38   ;;  %v320_v38 = vld [vmem:[%s2532_s1 + $0xc8] sm:$0xff] }
  0x48   : > { %376 = vperm.xlu1 %1721, %v330_v39   ;;  %v321_v39 = vld [vmem:[%s2532_s1 + $0xd0] sm:$0xff] }
  0x4a   : > { %1623 = vmatpush3.xpose.msk.msra.mxu0 %vm519_vm0, %v283_v37  ;;  %v1221_v37 = vld [vmem:[%s2536_s5 + $0x58] sm:$0xff] }
  0x4b   : > { %1624 = vmatprep.subr.msk.mxu0 %vm519_vm0, %v282_v40  ;;  %451 = vperm.xlu0 %1720, %v345_v41   ;;  %v1223_v41 = vld [vmem:[%s2536_s5 + $0x68] sm:$0xff] }
  0x4c   : > { %371 = vperm.xlu1 %1721, %v329_v42   ;;  %v322_v42 = vld [vmem:[%s2532_s1 + $0xd8] sm:$0xff] }
  0x4e   : > { %1625 = vmatpush3.xpose.msk.msra.mxu0 %vm519_vm0, %v282_v40  ;;  %v1222_v40 = vld [vmem:[%s2536_s5 + $0x60] sm:$0xff] }
  0x4f   : > { %1626 = vmatprep.subr.msk.mxu0 %vm519_vm0, %v281_v43  ;;  %446 = vperm.xlu0 %1720, %v344_v44   ;;  %v1224_v44 = vld [vmem:[%s2536_s5 + $0x70] sm:$0xff] }
  0x50   : > { %366 = vperm.xlu1 %1721, %v328_v45   ;;  %v1225_v45 = vld [vmem:[%s2536_s5 + $0x78] sm:$0xff] }
  0x52   : > { %1627 = vmatpush3.xpose.msk.msra.mxu0 %vm519_vm0, %v281_v43  ;;  %v323_v43 = vld [vmem:[%s2532_s1 + $0xe0] sm:$0xff] }
  0x53   : > { %1628 = vmatprep.subr.msk.mxu0 %vm519_vm0, %v280_v46  ;;  %441 = vperm.xlu0 %1720, %v343_v47   ;;  %v325_v47 = vld [vmem:[%s2532_s1 + $0xf0] sm:$0xff] }
  0x54   : > { %361 = vperm.xlu1 %1721, %v327_v48   ;;  %v326_v48 = vld [vmem:[%s2532_s1 + $0xf8] sm:$0xff] }
  0x56   : > { %1629 = vmatpush3.xpose.msk.msra.mxu0 %vm519_vm0, %v280_v46  ;;  %v324_v46 = vld [vmem:[%s2532_s1 + $0xe8] sm:$0xff] }
  0x57   : > { %1630 = vmatprep.subr.msk.mxu0 %vm519_vm0, %v279_v49  ;;  %971 = vperm.xlu0 %1720, %v953_v50  }
  0x58   : > { %976 = vperm.xlu1 %1721, %v954_v51  }
  0x5a   : > { %1631 = vmatpush3.xpose.msk.msra.mxu0 %vm519_vm0, %v279_v49  ;;  %v922_v49 = vld [vmem:[%s2534_s3 + $0x8] sm:$0xff] }
  0x5b   : > { %981 = vperm.xlu0 %1720, %v955_v52   ;;  %1113 = vmatprep.mubr.f32.mxu1 %v922_v49 }
  0x5c   : > { %986 = vperm.xlu1 %1721, %v956_v53  }
  0x5d   : > { %1633 = vmatmul.mubr.msk.f32.vlgmr.msra.gmra.mxu0 %vm519_vm0, %v296_v54 }
  0x5e   : > { %1635 = vmatprep.mubr.msk.f32.mxu0 %vm519_vm0, %v297_v55 }
  0x5f   : > { %991 = vperm.xlu0 %1720, %v957_v56  }
  0x60   : > { %996 = vperm.xlu1 %1721, %v958_v57  }
  0x61   : > { %1636 = vmatmul.mubr.msk.f32.gmra.mxu0 %vm519_vm0, %v298_v58 }
  0x62   : > { %1638 = vmatprep.mubr.msk.f32.mxu0 %vm519_vm0, %v299_v59 }
  0x63   : > { %1001 = vperm.xlu0 %1720, %v959_v60  }
  0x64   : > { %1006 = vperm.xlu1 %1721, %v960_v61  }
  0x65   : > { %1639 = vmatmul.mubr.msk.f32.gmra.mxu0 %vm519_vm0, %v300_v62 }
  0x66   : > { %1641 = vmatprep.mubr.msk.f32.mxu0 %vm519_vm0, %v301_v63 }
  0x67   : > { %1011 = vperm.xlu0 %1720, %v961_v0  }
  0x68   : > { %1016 = vperm.xlu1 %1721, %v962_v1  }
  0x69   : > { %1642 = vmatmul.mubr.msk.f32.gmra.mxu0 %vm519_vm0, %v302_v2 }
  0x6a   : > { %1644 = vmatprep.mubr.msk.f32.mxu0 %vm519_vm0, %v303_v3 }
  0x6b   : > { %1228 = vperm.xlu0 %1720, %v1210_v4  }
  0x6c   : > { %1233 = vperm.xlu1 %1721, %v1211_v5  }
  0x6d   : > { %1645 = vmatmul.mubr.msk.f32.gmra.mxu0 %vm519_vm0, %v304_v6 }
  0x6e   : > { %1647 = vmatprep.mubr.msk.f32.mxu0 %vm519_vm0, %v305_v7 }
  0x6f   : > { %1021 = vperm.xlu0 %1720, %v963_v8  }
  0x70   : > { %1238 = vperm.xlu1 %1721, %v1212_v9  }
  0x71   : > { %1648 = vmatmul.mubr.msk.f32.gmra.mxu0 %vm519_vm0, %v306_v10 }
  0x72   : > { %1650 = vmatprep.mubr.msk.f32.mxu0 %vm519_vm0, %v307_v11 }
  0x73   : > { %1026 = vperm.xlu0 %1720, %v964_v12  }
  0x74   : > { %1243 = vperm.xlu1 %1721, %v1213_v13  }
  0x75   : > { %1651 = vmatmul.mubr.msk.f32.gmra.mxu0 %vm519_vm0, %v308_v14 }
  0x76   : > { %1653 = vmatprep.mubr.msk.f32.mxu0 %vm519_vm0, %v309_v15 }
  0x77   : > { %1031 = vperm.xlu0 %1720, %v965_v16  }
  0x78   : > { %1248 = vperm.xlu1 %1721, %v1214_v17  }
  0x79   : > { %1654 = vmatmul.mubr.msk.f32.gmra.mxu0 %vm519_vm0, %v310_v18 }
  0x7a   : > { %1656 = vmatprep.mubr.msk.f32.mxu0 %vm519_vm0, %v311_v19 }
  0x7b   : > { %1036 = vperm.xlu0 %1720, %v966_v20  }
  0x7c   : > { %1253 = vperm.xlu1 %1721, %v1215_v21  }
  0x7d   : > { %1657 = vmatmul.mubr.msk.f32.gmra.mxu0 %vm519_vm0, %v312_v22 }
  0x7e   : > { %1659 = vmatprep.mubr.msk.f32.mxu0 %vm519_vm0, %v313_v23 }
  0x7f   : > { %1041 = vperm.xlu0 %1720, %v967_v24  }
  0x80   : > { %1258 = vperm.xlu1 %1721, %v1216_v25  }
  0x81   : > { %1660 = vmatmul.mubr.msk.f32.gmra.mxu0 %vm519_vm0, %v314_v26 }
  0x82   : > { %1662 = vmatprep.mubr.msk.f32.mxu0 %vm519_vm0, %v315_v27 }
  0x83   : > { %1046 = vperm.xlu0 %1720, %v968_v28  }
  0x84   : > { %1263 = vperm.xlu1 %1721, %v1217_v29  }
  0x85   : > { %1663 = vmatmul.mubr.msk.f32.gmra.mxu0 %vm519_vm0, %v316_v30 }
  0x86   : > { %1665 = vmatprep.mubr.msk.f32.mxu0 %vm519_vm0, %v317_v31 }
  0x87   : > { %1268 = vperm.xlu0 %1720, %v1218_v32  }
  0x88   : > { %1273 = vperm.xlu1 %1721, %v1219_v33  }
  0x89   : > { %1666 = vmatmul.mubr.msk.f32.gmra.mxu0 %vm519_vm0, %v318_v34 }
  0x8a   : > { %1668 = vmatprep.mubr.msk.f32.mxu0 %vm519_vm0, %v319_v35 }
  0x8b   : > { %1278 = vperm.xlu0 %1720, %v1220_v36  }
  0x8c   : > { %1283 = vperm.xlu1 %1721, %v1221_v37  }
  0x8d   : > { %1669 = vmatmul.mubr.msk.f32.gmra.mxu0 %vm519_vm0, %v320_v38 }
  0x8e   : > { %1671 = vmatprep.mubr.msk.f32.mxu0 %vm519_vm0, %v321_v39 }
  0x8f   : > { %1288 = vperm.xlu0 %1720, %v1222_v40  }
  0x90   : > { %1293 = vperm.xlu1 %1721, %v1223_v41  }
  0x91   : > { %1672 = vmatmul.mubr.msk.f32.gmra.mxu0 %vm519_vm0, %v322_v42 }
  0x92   : > { %1674 = vmatprep.mubr.msk.f32.mxu0 %vm519_vm0, %v323_v43  ;;  %v517_v50 = vpop.permute.xlu0 %516  ;;  %v512_v51 = vpop.permute.xlu1 %511 }
  0x93   : > { %1298 = vperm.xlu0 %1720, %v1224_v44  }
  0x94   : > { %1303 = vperm.xlu1 %1721, %v1225_v45  }
  0x95   : > { %1675 = vmatmul.mubr.msk.f32.gmra.mxu0 %vm519_vm0, %v324_v46 }
  0x96   : > { %1677 = vmatprep.mubr.msk.f32.mxu0 %vm519_vm0, %v325_v47  ;;  %v437_v54 = vpop.permute.xlu0 %436  ;;  %v432_v56 = vpop.permute.xlu1 %431 }
  0x99   : > { %1678 = vmatmul.mubr.msk.f32.gmra.mxu0 %vm519_vm0, %v326_v48 }
  0x9a   : > { %v507_v59 = vpop.permute.xlu0 %506 }
  0x9b   : > { %v427_v61 = vpop.permute.xlu1 %426 }
  0x9e   : > { %v502_v0 = vpop.permute.xlu0 %501 }
  0x9f   : > { %v422_v2 = vpop.permute.xlu1 %421 }
  0xa2   : > { %v497_v5 = vpop.permute.xlu0 %496 }
  0xa3   : > { %v417_v7 = vpop.permute.xlu1 %416 }
  0xa6   : > { %v492_v10 = vpop.permute.xlu0 %491 }
  0xa7   : > { %v412_v12 = vpop.permute.xlu1 %411 }
  0xaa   : > { %v487_v15 = vpop.permute.xlu0 %486 }
  0xab   : > { %v407_v17 = vpop.permute.xlu1 %406 }
  0xae   : > { %v482_v20 = vpop.permute.xlu0 %481 }
  0xaf   : > { %v402_v22 = vpop.permute.xlu1 %401 }
  0xb2   : > { %v477_v25 = vpop.permute.xlu0 %476 }
  0xb3   : > { %v397_v27 = vpop.permute.xlu1 %396 }
  0xb6   : > { %v472_v30 = vpop.permute.xlu0 %471 }
  0xb7   : > { %v392_v32 = vpop.permute.xlu1 %391 }
  0xba   : > { %v467_v35 = vpop.permute.xlu0 %466 }
  0xbb   : > { %v387_v37 = vpop.permute.xlu1 %386 }
  0xbe   : > { %v462_v45 = vpop.permute.xlu0 %461 }
  0xbf   : > { %v382_v47 = vpop.permute.xlu1 %381 }
 0x11d   : > { %v2350_v52 = vpop.f32.mrf.mxu0 }
 0x11f   : > { %v2352_v53 = vpop.f32.mrf.mxu0 }
 0x120   : > { %2541 = vst [vmem:[#allocation6_spill] sm:$0xff] %v2352_v53 }
 0x121   : > { %v2354_v55 = vpop.f32.mrf.mxu0 }
 0x123   : > { %v2356_v57 = vpop.f32.mrf.mxu0 }
 0x125   : > { %v2358_v58 = vpop.f32.mrf.mxu0 }
 0x127   : > { %v2360_v60 = vpop.f32.mrf.mxu0 }
 0x129   : > { %v2362_v62 = vpop.f32.mrf.mxu0 }
 0x12b   : > { %v2364_v63 = vpop.f32.mrf.mxu0 }
 0x12d   : > { %v2366_v1 = vpop.f32.mrf.mxu0 }
 0x12f   : > { %v2368_v3 = vpop.f32.mrf.mxu0 }
 0x131   : > { %v1649_v4 = vpop.f32.mrf.mxu0 }
 0x133   : > { %v780_v6 = vpop.f32.mrf.mxu0 }
 0x135   : > { %v1652_v8 = vpop.f32.mrf.mxu0 }
 0x136   : > { %v796_v46 = vadd.f32 %v1652_v8, %v427_v61 }
 0x137   : > { %v790_v9 = vpop.f32.mrf.mxu0 }
 0x138   : > { %v791_v49 = vadd.f32 %v790_v9, %v422_v2 }
 0x139   : > { %v1655_v11 = vpop.f32.mrf.mxu0 }
 0x13a   : > { %v806_v38 = vadd.f32 %v1655_v11, %v437_v54 }
 0x13b   : > { %v800_v13 = vpop.f32.mrf.mxu0 }
 0x13c   : > { %v801_v41 = vadd.f32 %v800_v13, %v432_v56  ;;  %v781_v56 = vadd.f32 %v780_v6, %v412_v12  ;;  %v756_v13 = vadd.f32 %v2358_v58, %v387_v37 }
 0x13d   : > { %v2370_v14 = vpop.f32.mrf.mxu0 }
 0x13f   : > { %v2372_v16 = vpop.f32.mrf.mxu0 }
 0x140   : > { %2542 = vst [vmem:[#allocation7_spill] sm:$0xff] %v2372_v16  ;;  %v786_v16 = vadd.f32 %v1649_v4, %v417_v7  ;;  %v766_v7 = vadd.f32 %v2362_v62, %v397_v27 }
 0x141   : > { %v2374_v18 = vpop.f32.mrf.mxu0 }
 0x143   : > { %v2376_v19 = vpop.f32.mrf.mxu0 }
 0x145   : > { %v2378_v21 = vpop.f32.mrf.mxu0 }
 0x147   : > { %v2380_v23 = vpop.f32.mrf.mxu0 }
 0x149   : > { %v1667_v24 = vpop.f32.mrf.mxu0 }
 0x14a   : > { %v846_v2 = vadd.f32 %v1667_v24, %v477_v25 }
 0x14b   : > { %v840_v26 = vpop.f32.mrf.mxu0 }
 0x14c   : > { %v841_v9 = vadd.f32 %v840_v26, %v472_v30 }
 0x14d   : > { %v1670_v28 = vpop.f32.mrf.mxu0 }
 0x14e   : > { %v856_v11 = vadd.f32 %v1670_v28, %v487_v15  ;;  %v831_v15 = vadd.f32 %v2380_v23, %v462_v45 }
 0x14f   : > { %v850_v29 = vpop.f32.mrf.mxu0 }
 0x150   : > { %v851_v61 = vadd.f32 %v850_v29, %v482_v20 }
 0x151   : > { %v1673_v31 = vpop.f32.mrf.mxu0 }
 0x152   : > { %v866_v53 = vadd.f32 %v1673_v31, %v497_v5  ;;  %v2543_v31 = vld [vmem:[#allocation7_spill] sm:$0xff] }
 0x153   : > { %v860_v33 = vpop.f32.mrf.mxu0 }
 0x154   : > { %v861_v54 = vadd.f32 %v860_v33, %v492_v10  ;;  %v2544_v33 = vld [vmem:[#allocation6_spill] sm:$0xff] }
 0x155   : > { %v1676_v34 = vpop.f32.mrf.mxu0 }
 0x156   : > { %v876_v43 = vadd.f32 %v1676_v34, %v507_v59  ;;  %v377_v59 = vpop.permute.xlu1 %376 }
 0x157   : > { %v870_v36 = vpop.f32.mrf.mxu0  ;;  %v746_v24 = vadd.f32 %v2354_v55, %v377_v59  ;;  %v926_v59 = vld [vmem:[%s2534_s3 + $0x28] sm:$0xff] }
 0x158   : > { %v871_v48 = vadd.f32 %v870_v36, %v502_v0  ;;  %v771_v0 = vadd.f32 %v2368_v3, %v402_v22  ;;  %v836_v3 = vadd.f32 %v2378_v21, %v467_v35 }
 0x159   : > { %v1679_v39 = vpop.f32.mrf.mxu0 }
 0x15a   : > { %v886_v40 = vadd.f32 %v1679_v39, %v517_v50  ;;  %v457_v50 = vpop.permute.xlu0 %456  ;;  %v372_v8 = vpop.permute.xlu1 %371 }
 0x15b   : > { %v880_v42 = vpop.f32.mrf.mxu0  ;;  %v826_v22 = vadd.f32 %v2374_v18, %v457_v50  ;;  %v924_v50 = vld [vmem:[%s2534_s3 + $0x18] sm:$0xff] }
 0x15c   : > { %1722 = vtanh.f32 %v886_v40  ;;  %v881_v44 = vadd.f32 %v880_v42, %v512_v51  ;;  %v776_v51 = vadd.f32 %v2366_v1, %v407_v17  ;;  %v761_v1 = vadd.f32 %v2364_v63, %v392_v32 }
 0x15d   : > { %1724 = vtanh.f32 %v806_v38  ;;  %v751_v63 = vadd.f32 %v2360_v60, %v382_v47  ;;  %v741_v60 = vadd.f32 %v2356_v57, %v372_v8  ;;  %v936_v8 = vld [vmem:[%s2534_s3 + $0x78] sm:$0xff] }
 0x15e   : > { %1726 = vtanh.f32 %v881_v44  ;;  %v452_v5 = vpop.permute.xlu0 %451  ;;  %v367_v21 = vpop.permute.xlu1 %366 }
 0x15f   : > { %1728 = vtanh.f32 %v801_v41  ;;  %v821_v25 = vadd.f32 %v2376_v19, %v452_v5  ;;  %v736_v55 = vadd.f32 %v2350_v52, %v367_v21  ;;  %v931_v5 = vld [vmem:[%s2534_s3 + $0x50] sm:$0xff]  ;;  %v950_v21 = vld [vmem:[%s2534_s3 + $0xe8] sm:$0xff] }
 0x160   : > { %1730 = vtanh.f32 %v876_v43 }
 0x161   : > { %1732 = vtanh.f32 %v796_v46 }
 0x162   : > { %1734 = vtanh.f32 %v871_v48  ;;  %v447_v17 = vpop.permute.xlu0 %446  ;;  %v362_v19 = vpop.permute.xlu1 %361 }
 0x163   : > { %1736 = vtanh.f32 %v791_v49  ;;  %v816_v18 = vadd.f32 %v2370_v14, %v447_v17  ;;  %v731_v34 = vadd.f32 %v2544_v33, %v362_v19  ;;  %v921_v49 = vld [vmem:[%s2534_s3] sm:$0xff] }
 0x164   : > { %1738 = vtanh.f32 %v866_v53  ;;  %v945_v17 = vld [vmem:[%s2534_s3 + $0xc0] sm:$0xff] }
 0x165   : > { %1740 = vtanh.f32 %v786_v16 }
 0x166   : > { %1742 = vtanh.f32 %v861_v54  ;;  %v442_v29 = vpop.permute.xlu0 %441 }
 0x167   : > { %1744 = vtanh.f32 %v781_v56  ;;  %v811_v32 = vadd.f32 %v2543_v31, %v442_v29  ;;  %v923_v56 = vld [vmem:[%s2534_s3 + $0x10] sm:$0xff] }
 0x168   : > { %1746 = vtanh.f32 %v856_v11  ;;  %v925_v11 = vld [vmem:[%s2534_s3 + $0x20] sm:$0xff] }
 0x169   : > { %v1723_v4 = vpop.eup %1722  ;;  %1748 = vtanh.f32 %v776_v51  ;;  %v928_v51 = vld [vmem:[%s2534_s3 + $0x38] sm:$0xff] }
 0x16a   : > { %v1725_v6 = vpop.eup %1724  ;;  %1750 = vtanh.f32 %v851_v61  ;;  %1520 = vmatprep.subr.mxu1 %v1723_v4  ;;  %v927_v61 = vld [vmem:[%s2534_s3 + $0x30] sm:$0xff]  ;;  %v932_v4 = vld [vmem:[%s2534_s3 + $0x58] sm:$0xff] }
 0x16b   : > { %v1727_v53 = vpop.eup %1726  ;;  %1752 = vtanh.f32 %v771_v0  ;;  %1521 = vmatpush3.msra.mxu1 %v1725_v6  ;;  %v930_v0 = vld [vmem:[%s2534_s3 + $0x48] sm:$0xff]  ;;  %v933_v6 = vld [vmem:[%s2534_s3 + $0x60] sm:$0xff] }
 0x16c   : > { %v1729_v10 = vpop.eup %1728  ;;  %1754 = vtanh.f32 %v846_v2  ;;  %1522 = vmatprep.subr.mxu1 %v1727_v53  ;;  %v929_v2 = vld [vmem:[%s2534_s3 + $0x40] sm:$0xff]  ;;  %v938_v53 = vld [vmem:[%s2534_s3 + $0x88] sm:$0xff] }
 0x16d   : > { %v1731_v12 = vpop.eup %1730  ;;  %1756 = vtanh.f32 %v766_v7  ;;  %1523 = vmatpush3.msra.mxu1 %v1729_v10  ;;  %v934_v7 = vld [vmem:[%s2534_s3 + $0x68] sm:$0xff]  ;;  %v940_v10 = vld [vmem:[%s2534_s3 + $0x98] sm:$0xff] }
 0x16e   : > { %v1733_v62 = vpop.eup %1732  ;;  %1758 = vtanh.f32 %v841_v9  ;;  %1524 = vmatprep.subr.mxu1 %v1731_v12  ;;  %v935_v9 = vld [vmem:[%s2534_s3 + $0x70] sm:$0xff]  ;;  %v942_v12 = vld [vmem:[%s2534_s3 + $0xa8] sm:$0xff] }
 0x16f   : > { %v1735_v16 = vpop.eup %1734  ;;  %1760 = vtanh.f32 %v761_v1  ;;  %1525 = vmatpush3.msra.mxu1 %v1733_v62  ;;  %v937_v1 = vld [vmem:[%s2534_s3 + $0x80] sm:$0xff]  ;;  %v944_v62 = vld [vmem:[%s2534_s3 + $0xb8] sm:$0xff] }
 0x170   : > { %v1737_v20 = vpop.eup %1736  ;;  %1762 = vtanh.f32 %v836_v3  ;;  %1526 = vmatprep.subr.mxu1 %v1735_v16  ;;  %v939_v3 = vld [vmem:[%s2534_s3 + $0x90] sm:$0xff]  ;;  %v946_v16 = vld [vmem:[%s2534_s3 + $0xc8] sm:$0xff] }
 0x171   : > { %v1739_v58 = vpop.eup %1738  ;;  %1764 = vtanh.f32 %v756_v13  ;;  %1527 = vmatpush3.msra.mxu1 %v1737_v20  ;;  %v941_v13 = vld [vmem:[%s2534_s3 + $0xa0] sm:$0xff]  ;;  %v947_v20 = vld [vmem:[%s2534_s3 + $0xd0] sm:$0xff] }
 0x172   : > { %v1741_v23 = vpop.eup %1740  ;;  %1766 = vtanh.f32 %v831_v15  ;;  %1528 = vmatprep.subr.mxu1 %v1739_v58  ;;  %v943_v15 = vld [vmem:[%s2534_s3 + $0xb0] sm:$0xff]  ;;  %v952_v58 = vld [vmem:[%s2534_s3 + $0xf8] sm:$0xff] }
 0x173   : > { %v1743_v26 = vpop.eup %1742  ;;  %1768 = vtanh.f32 %v751_v63  ;;  %1529 = vmatpush3.msra.mxu1 %v1741_v23  ;;  %v948_v63 = vld [vmem:[%s2534_s3 + $0xd8] sm:$0xff]  ;;  %v972_v23 = vpop.permute.xlu0 %971 }
 0x174   : > { %v1745_v27 = vpop.eup %1744  ;;  %1770 = vtanh.f32 %v826_v22  ;;  %1530 = vmatprep.subr.mxu1 %v1743_v26  ;;  %v949_v22 = vld [vmem:[%s2534_s3 + $0xe0] sm:$0xff] }
 0x175   : > { %v1747_v28 = vpop.eup %1746  ;;  %1772 = vtanh.f32 %v746_v24  ;;  %1531 = vmatpush3.msra.mxu1 %v1745_v27  ;;  %v951_v24 = vld [vmem:[%s2534_s3 + $0xf0] sm:$0xff] }
 0x176   : > { %v1749_v30 = vpop.eup %1748  ;;  %1774 = vtanh.f32 %v821_v25  ;;  %1532 = vmatprep.subr.mxu1 %v1747_v28  ;;  %v977_v25 = vpop.permute.xlu1 %976 }
 0x177   : > { %v1751_v57 = vpop.eup %1750  ;;  %1776 = vtanh.f32 %v741_v60  ;;  %1533 = vmatpush3.msra.mxu1 %v1749_v30  ;;  %v982_v26 = vpop.permute.xlu0 %981 }
 0x178   : > { %v1753_v14 = vpop.eup %1752  ;;  %1778 = vtanh.f32 %v816_v18  ;;  %1534 = vmatprep.subr.mxu1 %v1751_v57 }
 0x179   : > { %v1755_v35 = vpop.eup %1754  ;;  %1780 = vtanh.f32 %v736_v55  ;;  %1535 = vmatpush3.msra.mxu1 %v1753_v14 }
 0x17a   : > { %v1757_v52 = vpop.eup %1756  ;;  %1782 = vtanh.f32 %v811_v32  ;;  %1536 = vmatprep.subr.mxu1 %v1755_v35  ;;  %v987_v60 = vpop.permute.xlu1 %986 }
 0x17b   : > { %v1759_v36 = vpop.eup %1758  ;;  %1784 = vtanh.f32 %v731_v34  ;;  %1537 = vmatpush3.msra.mxu1 %v1757_v52  ;;  %v992_v27 = vpop.permute.xlu0 %991 }
 0x17c   : > { %v1761_v37 = vpop.eup %1760  ;;  %1538 = vmatprep.subr.mxu1 %v1759_v36 }
 0x17d   : > { %v1763_v38 = vpop.eup %1762  ;;  %1539 = vmatpush3.msra.mxu1 %v1761_v37 }
 0x17e   : > { %v1765_v39 = vpop.eup %1764  ;;  %1540 = vmatprep.subr.mxu1 %v1763_v38  ;;  %v997_v28 = vpop.permute.xlu1 %996 }
 0x17f   : > { %v1767_v40 = vpop.eup %1766  ;;  %1541 = vmatpush3.msra.mxu1 %v1765_v39  ;;  %v1002_v55 = vpop.permute.xlu0 %1001 }
 0x180   : > { %v1769_v41 = vpop.eup %1768  ;;  %1542 = vmatprep.subr.mxu1 %v1767_v40 }
 0x181   : > { %v1771_v42 = vpop.eup %1770  ;;  %1543 = vmatpush3.msra.mxu1 %v1769_v41 }
 0x182   : > { %v1773_v43 = vpop.eup %1772  ;;  %1544 = vmatprep.subr.mxu1 %v1771_v42  ;;  %v1007_v31 = vpop.permute.xlu1 %1006 }
 0x183   : > { %v1775_v44 = vpop.eup %1774  ;;  %1545 = vmatpush3.msra.mxu1 %v1773_v43  ;;  %v1012_v57 = vpop.permute.xlu0 %1011 }
 0x184   : > { %v1777_v45 = vpop.eup %1776  ;;  %1546 = vmatprep.subr.mxu1 %v1775_v44 }
 0x185   : > { %v1779_v46 = vpop.eup %1778  ;;  %1547 = vmatpush3.msra.mxu1 %v1777_v45 }
 0x186   : > { %v1781_v47 = vpop.eup %1780  ;;  %1548 = vmatprep.subr.mxu1 %v1779_v46  ;;  %v1017_v14 = vpop.permute.xlu1 %1016 }
 0x187   : > { %v1783_v48 = vpop.eup %1782  ;;  %1549 = vmatpush3.msra.mxu1 %v1781_v47  ;;  %v2491_v52 = vpop.permute.xlu0 %1228 }
 0x188   : > { %v1785_v54 = vpop.eup %1784  ;;  %1550 = vmatprep.subr.mxu1 %v1783_v48 }
 0x189   : > { %1551 = vmatpush3.msra.mxu1 %v1785_v54 }
 0x18a   : > { %1114 = vmatmul.mubr.f32.vlgmr.msra.gmra.mxu1 %v921_v49  ;;  %v1234_v38 = vpop.permute.xlu1 %1233 }
 0x18b   : > { %1118 = vmatprep.mubr.f32.mxu1 %v924_v50  ;;  %v1022_v40 = vpop.permute.xlu0 %1021 }
 0x18e   : > { %1119 = vmatmul.mubr.f32.gmra.mxu1 %v923_v56  ;;  %v2493_v43 = vpop.permute.xlu1 %1238 }
 0x18f   : > { %1123 = vmatprep.mubr.f32.mxu1 %v926_v59  ;;  %v1027_v46 = vpop.permute.xlu0 %1026 }
 0x192   : > { %1124 = vmatmul.mubr.f32.gmra.mxu1 %v925_v11  ;;  %v1244_v59 = vpop.permute.xlu1 %1243 }
 0x193   : > { %1128 = vmatprep.mubr.f32.mxu1 %v928_v51 }
 0x196   : > { %1129 = vmatmul.mubr.f32.gmra.mxu1 %v927_v61 }
 0x197   : > { %1133 = vmatprep.mubr.f32.mxu1 %v930_v0 }
 0x19a   : > { %1134 = vmatmul.mubr.f32.gmra.mxu1 %v929_v2  ;;  %v1032_v2 = vpop.permute.xlu0 %1031 }
 0x19b   : > { %1138 = vmatprep.mubr.f32.mxu1 %v932_v4 }
 0x19e   : > { %1139 = vmatmul.mubr.f32.gmra.mxu1 %v931_v5 }
 0x19f   : > { %1143 = vmatprep.mubr.f32.mxu1 %v934_v7 }
 0x1a2   : > { %1144 = vmatmul.mubr.f32.gmra.mxu1 %v933_v6 }
 0x1a3   : > { %1148 = vmatprep.mubr.f32.mxu1 %v936_v8 }
 0x1a6   : > { %1149 = vmatmul.mubr.f32.gmra.mxu1 %v935_v9 }
 0x1a7   : > { %1153 = vmatprep.mubr.f32.mxu1 %v938_v53  ;;  %v1249_v53 = vpop.permute.xlu1 %1248 }
 0x1aa   : > { %1154 = vmatmul.mubr.f32.gmra.mxu1 %v937_v1 }
 0x1ab   : > { %1158 = vmatprep.mubr.f32.mxu1 %v940_v10 }
 0x1ae   : > { %1159 = vmatmul.mubr.f32.gmra.mxu1 %v939_v3 }
 0x1af   : > { %1163 = vmatprep.mubr.f32.mxu1 %v942_v12  ;;  %v1037_v12 = vpop.permute.xlu0 %1036 }
 0x1b2   : > { %1164 = vmatmul.mubr.f32.gmra.mxu1 %v941_v13 }
 0x1b3   : > { %1168 = vmatprep.mubr.f32.mxu1 %v944_v62 }
 0x1b6   : > { %1169 = vmatmul.mubr.f32.gmra.mxu1 %v943_v15 }
 0x1b7   : > { %1173 = vmatprep.mubr.f32.mxu1 %v946_v16 }
 0x1ba   : > { %1174 = vmatmul.mubr.f32.gmra.mxu1 %v945_v17 }
 0x1bb   : > { %1178 = vmatprep.mubr.f32.mxu1 %v948_v63 }
 0x1be   : > { %1179 = vmatmul.mubr.f32.gmra.mxu1 %v947_v20  ;;  %v1254_v20 = vpop.permute.xlu1 %1253 }
 0x1bf   : > { %1183 = vmatprep.mubr.f32.mxu1 %v950_v21 }
 0x1c2   : > { %1184 = vmatmul.mubr.f32.gmra.mxu1 %v949_v22 }
 0x1c3   : > { %1188 = vmatprep.mubr.f32.mxu1 %v952_v58 }
 0x1c6   : > { %1189 = vmatmul.mubr.f32.gmra.mxu1 %v951_v24  ;;  %v1042_v24 = vpop.permute.xlu0 %1041 }
 0x24a   : > { %v1552_v18 = vpop.f32.mrf.mxu1 }
 0x24c   : > { %v1553_v29 = vpop.f32.mrf.mxu1 }
 0x24d   : > { %v1554_v47 = vadd.f32 %v1553_v29, %v1552_v18 }
 0x24e   : > { %v1555_v30 = vpop.f32.mrf.mxu1 }
 0x24f   : > { %v1116_v11 = vadd.f32 %v1554_v47, %v972_v23 }
 0x250   : > { %v1556_v19 = vpop.f32.mrf.mxu1 }
 0x251   : > { %v1557_v45 = vadd.f32 %v1556_v19, %v1555_v30 }
 0x252   : > { %v1558_v32 = vpop.f32.mrf.mxu1 }
 0x253   : > { %v1121_v50 = vadd.f32 %v1557_v45, %v977_v25 }
 0x254   : > { %v1559_v33 = vpop.f32.mrf.mxu1 }
 0x255   : > { %v1560_v49 = vadd.f32 %v1559_v33, %v1558_v32  ;;  %1786 = vtanh.f32 %v1121_v50 }
 0x256   : > { %v1561_v34 = vpop.f32.mrf.mxu1  ;;  %1788 = vtanh.f32 %v1116_v11 }
 0x257   : > { %v1126_v61 = vadd.f32 %v1560_v49, %v982_v26 }
 0x258   : > { %v1562_v35 = vpop.f32.mrf.mxu1 }
 0x259   : > { %v1563_v56 = vadd.f32 %v1562_v35, %v1561_v34  ;;  %1790 = vtanh.f32 %v1126_v61 }
 0x25a   : > { %v1564_v36 = vpop.f32.mrf.mxu1 }
 0x25b   : > { %v1131_v5 = vadd.f32 %v1563_v56, %v987_v60 }
 0x25c   : > { %v1565_v37 = vpop.f32.mrf.mxu1 }
 0x25d   : > { %v1566_v0 = vadd.f32 %v1565_v37, %v1564_v36  ;;  %1792 = vtanh.f32 %v1131_v5 }
 0x25e   : > { %v1567_v39 = vpop.f32.mrf.mxu1 }
 0x25f   : > { %v1136_v8 = vadd.f32 %v1566_v0, %v992_v27 }
 0x260   : > { %v1568_v41 = vpop.f32.mrf.mxu1 }
 0x261   : > { %v1569_v7 = vadd.f32 %v1568_v41, %v1567_v39  ;;  %1794 = vtanh.f32 %v1136_v8 }
 0x262   : > { %v1570_v42 = vpop.f32.mrf.mxu1  ;;  %v1787_v60 = vpop.eup %1786 }
 0x263   : > { %v1141_v10 = vadd.f32 %v1569_v7, %v997_v28  ;;  %v1789_v18 = vpop.eup %1788  ;;  %v1307_v19 = vmul.f32 %v1787_v60, %v1234_v38 }
 0x264   : > { %v1571_v44 = vpop.f32.mrf.mxu1  ;;  %v1306_v35 = vmul.f32 %v1789_v18, %v2491_v52 }
 0x265   : > { %v1572_v9 = vadd.f32 %v1571_v44, %v1570_v42  ;;  %1796 = vtanh.f32 %v1141_v10 }
 0x266   : > { %v1573_v48 = vpop.f32.mrf.mxu1  ;;  %v1791_v29 = vpop.eup %1790  ;;  %v1322_v41 = vadd.f32 %v1307_v19, %v1306_v35 }
 0x267   : > { %v1146_v62 = vadd.f32 %v1572_v9, %v1002_v55  ;;  %v1259_v55 = vpop.permute.xlu1 %1258 }
 0x268   : > { %v1574_v54 = vpop.f32.mrf.mxu1 }
 0x269   : > { %v1575_v3 = vadd.f32 %v1574_v54, %v1573_v48  ;;  %1798 = vtanh.f32 %v1146_v62 }
 0x26a   : > { %v1576_v51 = vpop.f32.mrf.mxu1  ;;  %v1793_v33 = vpop.eup %1792 }
 0x26b   : > { %v1151_v17 = vadd.f32 %v1575_v3, %v1007_v31  ;;  %v1264_v38 = vpop.permute.xlu1 %1263 }
 0x26c   : > { %v1577_v4 = vpop.f32.mrf.mxu1 }
 0x26d   : > { %v1578_v15 = vadd.f32 %v1577_v4, %v1576_v51  ;;  %1800 = vtanh.f32 %v1151_v17 }
 0x26e   : > { %v1579_v6 = vpop.f32.mrf.mxu1  ;;  %v1795_v37 = vpop.eup %1794 }
 0x26f   : > { %v1156_v22 = vadd.f32 %v1578_v15, %v1012_v57  ;;  %v1047_v57 = vpop.permute.xlu0 %1046  ;;  %v1310_v47 = vmul.f32 %v1795_v37, %v1249_v53  ;;  %v1274_v4 = vpop.permute.xlu1 %1273 }
 0x270   : > { %v1580_v1 = vpop.f32.mrf.mxu1 }
 0x271   : > { %v1581_v63 = vadd.f32 %v1580_v1, %v1579_v6  ;;  %1802 = vtanh.f32 %v1156_v22 }
 0x272   : > { %v1582_v13 = vpop.f32.mrf.mxu1  ;;  %v1797_v44 = vpop.eup %1796 }
 0x273   : > { %v1161_v25 = vadd.f32 %v1581_v63, %v1017_v14  ;;  %v1308_v14 = vmul.f32 %v1791_v29, %v2493_v43  ;;  %v1269_v54 = vpop.permute.xlu0 %1268  ;;  %v1311_v43 = vmul.f32 %v1797_v44, %v1254_v20 }
 0x274   : > { %v1583_v16 = vpop.f32.mrf.mxu1 }
 0x275   : > { %v1584_v58 = vadd.f32 %v1583_v16, %v1582_v13  ;;  %1804 = vtanh.f32 %v1161_v25  ;;  %v1284_v16 = vpop.permute.xlu1 %1283 }
 0x276   : > { %v1585_v21 = vpop.f32.mrf.mxu1  ;;  %v1799_v49 = vpop.eup %1798 }
 0x277   : > { %v1166_v28 = vadd.f32 %v1584_v58, %v1022_v40  ;;  %v1309_v40 = vmul.f32 %v1793_v33, %v1244_v59  ;;  %v1312_v59 = vmul.f32 %v1799_v49, %v1259_v55  ;;  %v1279_v53 = vpop.permute.xlu0 %1278 }
 0x278   : > { %v1586_v23 = vpop.f32.mrf.mxu1 }
 0x279   : > { %v1587_v26 = vadd.f32 %v1586_v23, %v1585_v21  ;;  %1806 = vtanh.f32 %v1166_v28 }
 0x27a   : > { %v1588_v27 = vpop.f32.mrf.mxu1  ;;  %v1801_v11 = vpop.eup %1800 }
 0x27b   : > { %v1171_v31 = vadd.f32 %v1587_v26, %v1027_v46  ;;  %v1323_v46 = vadd.f32 %v1322_v41, %v1308_v14  ;;  %v1313_v6 = vmul.f32 %v1801_v11, %v1264_v38  ;;  %v1289_v21 = vpop.permute.xlu0 %1288  ;;  %v1294_v26 = vpop.permute.xlu1 %1293 }
 0x27c   : > { %v1589_v30 = vpop.f32.mrf.mxu1 }
 0x27d   : > { %v1590_v32 = vadd.f32 %v1589_v30, %v1588_v27  ;;  %1808 = vtanh.f32 %v1171_v31  ;;  %v1324_v50 = vadd.f32 %v1323_v46, %v1309_v40 }
 0x27e   : > { %v1591_v34 = vpop.f32.mrf.mxu1 }
 0x27f   : > { %v1176_v36 = vadd.f32 %v1590_v32, %v1032_v2  ;;  %v1325_v61 = vadd.f32 %v1324_v50, %v1310_v47  ;;  %v1803_v2 = vpop.eup %1802  ;;  %v1299_v28 = vpop.permute.xlu0 %1298 }
 0x280   : > { %v1592_v39 = vpop.f32.mrf.mxu1  ;;  %v1314_v10 = vmul.f32 %v1803_v2, %v1269_v54  ;;  %v1304_v31 = vpop.permute.xlu1 %1303 }
 0x281   : > { %v1593_v42 = vadd.f32 %v1592_v39, %v1591_v34  ;;  %1810 = vtanh.f32 %v1176_v36  ;;  %v1326_v7 = vadd.f32 %v1325_v61, %v1311_v43  ;;  %v1344_v39 = vstv %s1343_s24 }
 0x282   : > { %v1594_v45 = vpop.f32.mrf.mxu1  ;;  %v1805_v9 = vpop.eup %1804 }
 0x283   : > { %v1181_v48 = vadd.f32 %v1593_v42, %v1037_v12  ;;  %v1327_v1 = vadd.f32 %v1326_v7, %v1312_v59  ;;  %v1315_v62 = vmul.f32 %v1805_v9, %v1274_v4 }
 0x284   : > { %v1595_v52 = vpop.f32.mrf.mxu1 }
 0x285   : > { %1812 = vtanh.f32 %v1181_v48  ;;  %v1596_v56 = vadd.f32 %v1595_v52, %v1594_v45  ;;  %v1328_v13 = vadd.f32 %v1327_v1, %v1313_v6 }
 0x286   : > { %v1597_v51 = vpop.f32.mrf.mxu1  ;;  %v1807_v12 = vpop.eup %1806 }
 0x287   : > { %v1186_v0 = vadd.f32 %v1596_v56, %v1042_v24  ;;  %v1329_v17 = vadd.f32 %v1328_v13, %v1314_v10  ;;  %v1316_v63 = vmul.f32 %v1807_v12, %v1279_v53 }
 0x288   : > { %v1598_v5 = vpop.f32.mrf.mxu1 }
 0x289   : > { %1814 = vtanh.f32 %v1186_v0  ;;  %v1599_v8 = vadd.f32 %v1598_v5, %v1597_v51  ;;  %v1330_v22 = vadd.f32 %v1329_v17, %v1315_v62 }
 0x28a   : > { %v1809_v15 = vpop.eup %1808 }
 0x28b   : > { %v1191_v3 = vadd.f32 %v1599_v8, %v1047_v57  ;;  %v1317_v58 = vmul.f32 %v1809_v15, %v1284_v16  ;;  %v1331_v23 = vadd.f32 %v1330_v22, %v1316_v63 }
 0x28d   : > { %1816 = vtanh.f32 %v1191_v3  ;;  %v1332_v60 = vadd.f32 %v1331_v23, %v1317_v58 }
 0x28e   : > { %v1811_v20 = vpop.eup %1810 }
 0x28f   : > { %v1318_v25 = vmul.f32 %v1811_v20, %v1289_v21 }
 0x291   : > { %v1333_v29 = vadd.f32 %v1332_v60, %v1318_v25 }
 0x292   : > { %v1813_v24 = vpop.eup %1812 }
 0x293   : > { %v1319_v27 = vmul.f32 %v1813_v24, %v1294_v26 }
 0x295   : > { %v1334_v30 = vadd.f32 %v1333_v29, %v1319_v27 }
 0x296   : > { %v1815_v18 = vpop.eup %1814 }
 0x297   : > { %v1320_v55 = vmul.f32 %v1815_v18, %v1299_v28 }
 0x299   : > { %v1335_v33 = vadd.f32 %v1334_v30, %v1320_v55 }
 0x29a   : > { %v1817_v19 = vpop.eup %1816 }
 0x29b   : > { %v1321_v32 = vmul.f32 %v1817_v19, %v1304_v31 }
 0x29d   : > { %v1336_v57 = vadd.f32 %v1335_v33, %v1321_v32 }
 0x29f   : > { %v1337_v34 = vrot.slane %v1336_v57, 4 }
 0x2a1   : > { %v1338_v35 = vadd.f32 %v1337_v34, %v1336_v57 }
 0x2a3   : > { %v1339_v14 = vrot.slane %v1338_v35, 2 }
 0x2a5   : > { %v1340_v36 = vadd.f32 %v1339_v14, %v1338_v35 }
 0x2a7   : > { %v1341_v37 = vrot.slane %v1340_v36, 1 }
 0x2a9   : > { %v1342_v41 = vadd.f32 %v1341_v37, %v1340_v36 }
 0x2ab   : > { %v1345_v40 = vadd.f32 %v1344_v39, %v1342_v41 }
 0x2ad   : > { %1346 = vst [vmem:[%s272_s6] sm:$0x1] %v1345_v40 }
 0x2ae   : > { %1831 = shalt.err (!%p1828_p3)
}
 0x2af   : > { %s1832_s21 = scalar_lea.hbm %s1358_s16, 16  ;;  %s1836_s23 = scalar_lea.hbm %s2538_s7, 32 }
 0x2b0   : > { %p1833_p4 = scmp.ne.s32.totalorder %s1358_s16, %s1832_s21  ;;  %p1837_p9 = scmp.lt.s32.totalorder %s1358_s16, %s2538_s7 }
 0x2b1   : > { %p1838_p10 = scmp.lt.s32.totalorder %s1836_s23, %s1832_s21 }
 0x2b2   : > { %p1834_p7 = pnand %p1833_p4, %p1960_p5 }
 0x2b3   : > { %p1839_p11 = por %p1838_p10, %p1837_p9 }
 0x2b4   : > { %p1835_p8 = pneg %p1834_p7 }
 0x2b6   : > { %p1840_p12 = pnand %p1839_p11, %p1835_p8 }
 0x2b8   : > { %1843 = shalt.err (!%p1840_p12)
}
 0x2b9   : > { %1680 = dma.vmem_to_hbm [thread:$0]  (%p1960_p5), %s1361_s30, 16, %s1358_s16, %s1348_s17  }
 0x2ba PF: > { %p1686_p13 = scmp.ge.s32.totalorder %s1878_s29, 2  ;;  %s1372_s6 = sand.u32 1, %s1866_s26  }
 0x2bb   : > { %s1373_s9 = scalar_lea.sflag [#allocation4], %s1372_s6 }
 0x2bc   : > { %p1683_p0 = pnand %p1686_p13, %p1964_p6 }
 0x2be   : > { %p1684_p1 = pneg %p1683_p0 }
 0x2c0   : > { %1861 = dma.done.wait (%p1684_p1), %s1373_s9, 16  }
 0x2c1   : > { %1863 = vsyncadd (%p1684_p1), %s1373_s9, 4294967280  ;;  %p18_p2 = scmp.ge.s32.totalorder %s1948_s8, 4   ;;  %s2545_s26 = smov %s1870_s27 }
 0x2c2   : > { %s2546_s27 = smov %s1874_s28  ;;  %s2547_s28 = smov %s1958_s11 }
 0x2c3   : > { %s2548_s29 = smov %s1948_s8  ;;  %20 = sbr.rel (!%p18_p2) target bundleno = 5 (0x5), region = 83 }
 0x2c8   :  { %1377 = vsyncpa [#allocation4], 1 }
 0x2c9   :  { %1379 = vsyncpa [#allocation4 + $0x1], 1 }

</bundles_post_ra>
